<compile_context>
chip_gen: v7x
topology: tpu7x:2x2x1
jax: 0.10.0
libtpu: 0.0.40
codegen_flags: <defaults>
</compile_context>

<pallas_src>
import jax
import jax.numpy as jnp
from jax.experimental import pallas as pl
from jax.experimental.pallas import tpu as pltpu


_HALF_PI = 1.5707963267948966
_QUARTER_PI = 0.7853981633974483
_PI = 3.141592653589793
_TAN_PI_8 = 0.4142135623730951


def _atan2(y, x):
    """Elementwise atan2 from guaranteed-lowerable VPU ops (no lax.atan2).

    Cephes atanf range reduction + degree-9 odd polynomial; max error ~2e-7.
    Note: signed-zero edge cases differ slightly from IEEE (atan2(-0., x<0)
    -> +pi, atan2(+/-0., -0.) -> 0); irrelevant for this network.
    """
    abs_y = jnp.abs(y)
    abs_x = jnp.abs(x)
    swap = abs_y > abs_x
    num = jnp.where(swap, abs_x, abs_y)
    den = jnp.where(swap, abs_y, abs_x)
    den = jnp.where(den == 0.0, 1.0, den)            # atan2(0, 0) -> 0
    t = num / den                                    # t in [0, 1]
    big = t > _TAN_PI_8
    u = jnp.where(big, (t - 1.0) / (t + 1.0), t)     # |u| <= tan(pi/8)
    u2 = u * u
    p = (((8.05374449538e-2 * u2 - 1.38776856032e-1) * u2
          + 1.99777106478e-1) * u2 - 3.33329491539e-1) * u2 * u + u
    at = jnp.where(big, p + _QUARTER_PI, p)          # atan(t) for t in [0, 1]
    at = jnp.where(swap, _HALF_PI - at, at)          # undo min/max swap
    at = jnp.where(x < 0.0, _PI - at, at)            # quadrants II / III
    return jnp.where(y < 0.0, -at, at)               # lower half-plane


def polarnet_kernel(x_ref, params_ref, b2_ref, *out_refs):
    out_ref = out_refs[0]

    # Batch is the lane dimension everywhere below.
    xc = x_ref[0:1, :]                   # (1, tb)
    yc = x_ref[1:2, :]                   # (1, tb)

    r = jnp.sqrt(xc * xc + yc * yc)      # (1, tb) polar radius
    a = _atan2(yc, xc)                   # (1, tb) polar angle (in-kernel)

    # Parameter columns, sliced once per invocation (resident (H, 4) slab).
    w1r = params_ref[:, 0:1]             # W1[:, 0]    (H, 1)
    w1a = params_ref[:, 1:2]             # W1[:, 1]    (H, 1)
    b1 = params_ref[:, 2:3]              # layer1.bias (H, 1)
    w2 = params_ref[:, 3:4]              # W2[0, :]    (H, 1)

    # layer1: W1 @ [r; a] + b1  ==  W1[:,0]*r + W1[:,1]*a + b1  -> (H, tb)
    # (K=2 is a degenerate MXU dim -> VPU rank-1 updates on purpose.)
    h = jnp.tanh(w1r * r + w1a * a + b1)                     # (H, tb), f32
    if len(out_refs) > 1:
        out_refs[1][...] = h.astype(out_refs[1].dtype)       # hidden1 (H, tb)

    # layer2: W2 @ h + b2  ==  sublane-reduce(w2 * h) + b2  (M=1 -> no MXU)
    pre2 = jnp.sum(w2 * h, axis=0, keepdims=True) + b2_ref[0, 0]
    out_ref[...] = jax.nn.sigmoid(pre2)                      # (1, tb)


def _pick_tile(B, block_batch):
    """Batch tile (lane dim): multiple of 128, or full extent B."""
    if B > block_batch:
        return block_batch            # partial last block handled by Pallas
    # B fits in one block; split into two lane-aligned halves when possible so
    # the "parallel" batch axis has >= 2 blocks for v7x's two TensorCores.
    if B >= 256 and B % 256 == 0:
        return B // 2
    return B


def polarnet_forward(x, W1, b1, W2, b2, *, block_batch=4096,
                     return_hidden=True, hidden_dtype=jnp.float32,
                     transpose_hidden=True):
    """PyTorch layout: x (B,2); W1 (H,2); b1 (H,); W2 (1,H); b2 (1,).

    Returns (output (B,1), hidden (B,H) or (H,B) or None).
    """
    B = x.shape[0]
    H = W1.shape[0]
    assert block_batch % 128 == 0

    # Batch on the lane axis: x -> (2, B); params packed as one (H, 4) slab.
    xT = x.astype(jnp.float32).T
    params = jnp.stack(
        [W1[:, 0], W1[:, 1], b1, W2.reshape(H)], axis=1).astype(jnp.float32)
    b2_smem = jnp.asarray(b2, jnp.float32).reshape(1, 1)

    tb = _pick_tile(B, block_batch)
    grid = (pl.cdiv(B, tb),)

    in_specs = [
        pl.BlockSpec((2, tb), lambda i: (0, i)),                 # x tile
        pl.BlockSpec((H, 4), lambda i: (0, 0)),                  # params, resident
        pl.BlockSpec((1, 1), lambda i: (0, 0),
                     memory_space=pltpu.MemorySpace.SMEM),       # b2 scalar
    ]
    out_spec_o = pl.BlockSpec((1, tb), lambda i: (0, i))
    compiler_params = pltpu.CompilerParams(
        dimension_semantics=("parallel",))   # v7x: shard batch over both TCs

    if return_hidden:
        out, hidden = pl.pallas_call(
            polarnet_kernel,
            grid=grid,
            in_specs=in_specs,
            out_specs=(out_spec_o, pl.BlockSpec((H, tb), lambda i: (0, i))),
            out_shape=(jax.ShapeDtypeStruct((1, B), jnp.float32),
                       jax.ShapeDtypeStruct((H, B), hidden_dtype)),
            compiler_params=compiler_params,
        )(xT, params, b2_smem)
        out = out.T                                  # (B, 1)
        if transpose_hidden:
            hidden = hidden.T                        # (B, H) PyTorch layout
        return out, hidden

    out = pl.pallas_call(
        polarnet_kernel,
        grid=grid,
        in_specs=in_specs,
        out_specs=out_spec_o,
        out_shape=jax.ShapeDtypeStruct((1, B), jnp.float32),
        compiler_params=compiler_params,
    )(xT, params, b2_smem)
    return out.T, None


def polarnet_reference(x, W1, b1, W2, b2):
    r = jnp.sqrt(x[:, 0] ** 2 + x[:, 1] ** 2)[:, None]
    a = jnp.arctan2(x[:, 1], x[:, 0])[:, None]
    polar = jnp.concatenate([r, a], axis=1)
    h = jnp.tanh(polar @ W1.T + b1[None, :])
    o = jax.nn.sigmoid(h @ W2.T + b2[None, :])
    return o, h


if __name__ == "__main__":
    num_hid = 32
    B = 512               # small; default tiling gives tb=256, grid=2

    key = jax.random.PRNGKey(0)
    k1, k2, k3, k4, k5 = jax.random.split(key, 5)

    # Deterministic PyTorch-style init: U(-1/sqrt(fan_in), 1/sqrt(fan_in)).
    bound1 = 1.0 / jnp.sqrt(2.0)
    W1 = jax.random.uniform(k1, (num_hid, 2), jnp.float32, -bound1, bound1)
    b1 = jax.random.uniform(k2, (num_hid,), jnp.float32, -bound1, bound1)
    bound2 = 1.0 / jnp.sqrt(float(num_hid))
    W2 = jax.random.uniform(k3, (1, num_hid), jnp.float32, -bound2, bound2)
    b2 = jax.random.uniform(k4, (1,), jnp.float32, -bound2, bound2)

    x = jax.random.normal(k5, (B, 2), jnp.float32)
    ref_out, ref_hidden = polarnet_reference(x, W1, b1, W2, b2)

    # 1) Default path (lane-major layout, tb=256, grid=2).
    out, hidden = polarnet_forward(x, W1, b1, W2, b2)
    out = jax.block_until_ready(out)
    hidden = jax.block_until_ready(hidden)
    assert out.shape == (B, 1) and hidden.shape == (B, num_hid)
    assert jnp.allclose(out, ref_out, atol=2e-5, rtol=2e-5)
    assert jnp.allclose(hidden, ref_hidden, atol=2e-5, rtol=2e-5)

    # 2) Output-only path (drops the (H, B) hidden writeback entirely).
    out_only, _ = polarnet_forward(x, W1, b1, W2, b2, return_hidden=False)
    out_only = jax.block_until_ready(out_only)
    assert jnp.allclose(out_only, ref_out, atol=2e-5, rtol=2e-5)

    # 3) Partial-last-block path (no wrapper pad/slice): B=500, tb=256, grid=2.
    Bo = 500
    xo = x[:Bo]
    out_o, hid_o = polarnet_forward(xo, W1, b1, W2, b2, block_batch=256)
    out_o = jax.block_until_ready(out_o)
    assert out_o.shape == (Bo, 1) and hid_o.shape == (Bo, num_hid)
    assert jnp.allclose(out_o, ref_out[:Bo], atol=2e-5, rtol=2e-5)
    assert jnp.allclose(hid_o, ref_hidden[:Bo], atol=2e-5, rtol=2e-5)

    # 4) bf16 hidden store (compute stays f32; halves hidden HBM writeback).
    out_bf, hid_bf = polarnet_forward(x, W1, b1, W2, b2,
                                      hidden_dtype=jnp.bfloat16)
    out_bf = jax.block_until_ready(out_bf)
    hid_bf = jax.block_until_ready(hid_bf)
    assert hid_bf.dtype == jnp.bfloat16
    assert jnp.allclose(out_bf, ref_out, atol=2e-5, rtol=2e-5)
    assert jnp.allclose(hid_bf.astype(jnp.float32), ref_hidden, atol=1e-2)

    print("KERNEL_OK")
</pallas_src>

<mosaic_0001>
module attributes {stable_mosaic.version = 11 : i64} {
  func.func @polarnet_kernel(%arg0: i32, %arg1: memref<2x256xf32, #tpu.memory_space<vmem>>, %arg2: memref<32x4xf32, #tpu.memory_space<vmem>>, %arg3: memref<1x1xf32, #tpu.memory_space<smem>>, %arg4: memref<1x256xf32, #tpu.memory_space<vmem>>, %arg5: memref<32x256xf32, #tpu.memory_space<vmem>>) attributes {dimension_semantics = [#tpu.dimension_semantics<parallel>], iteration_bounds = array<i64: 2>, scalar_prefetch = 0 : i64, scratch_operands = 0 : i64, tpu.core_type = #tpu.core_type<tc>, window_params = [{transform_indices = @transform_0, window_bounds = array<i64: 2, 256>}, {pipeline_mode = #tpu.pipeline_mode<synchronous>, transform_indices = @transform_1, window_bounds = array<i64: 32, 4>}, {transform_indices = @transform_2, window_bounds = array<i64: 1, 1>}, {transform_indices = @transform_3, window_bounds = array<i64: 1, 256>}, {transform_indices = @transform_4, window_bounds = array<i64: 32, 256>}]} {
    %c0 = arith.constant 0 : index
    %c0_0 = arith.constant 0 : index
    %0 = vector.load %arg1[%c0, %c0_0] : memref<2x256xf32, #tpu.memory_space<vmem>>, vector<1x256xf32>
    %c1 = arith.constant 1 : index
    %c0_1 = arith.constant 0 : index
    %1 = vector.load %arg1[%c1, %c0_1] : memref<2x256xf32, #tpu.memory_space<vmem>>, vector<1x256xf32>
    %2 = arith.mulf %0, %0 : vector<1x256xf32>
    %3 = arith.mulf %1, %1 : vector<1x256xf32>
    %4 = arith.addf %2, %3 : vector<1x256xf32>
    %5 = math.sqrt %4 : vector<1x256xf32>
    %6 = math.absf %1 : vector<1x256xf32>
    %7 = math.absf %0 : vector<1x256xf32>
    %8 = arith.cmpf ogt, %6, %7 : vector<1x256xf32>
    %9 = arith.select %8, %7, %6 : vector<1x256xi1>, vector<1x256xf32>
    %10 = arith.select %8, %6, %7 : vector<1x256xi1>, vector<1x256xf32>
    %cst = arith.constant 0.000000e+00 : f32
    %11 = vector.broadcast %cst : f32 to vector<1x256xf32>
    %12 = arith.cmpf oeq, %10, %11 : vector<1x256xf32>
    %cst_2 = arith.constant 1.000000e+00 : f32
    %13 = vector.broadcast %cst_2 : f32 to vector<1x256xf32>
    %14 = arith.select %12, %13, %10 : vector<1x256xi1>, vector<1x256xf32>
    %15 = arith.divf %9, %14 : vector<1x256xf32>
    %cst_3 = arith.constant 0.414213568 : f32
    %16 = vector.broadcast %cst_3 : f32 to vector<1x256xf32>
    %17 = arith.cmpf ogt, %15, %16 : vector<1x256xf32>
    %cst_4 = arith.constant 1.000000e+00 : f32
    %18 = vector.broadcast %cst_4 : f32 to vector<1x256xf32>
    %19 = arith.subf %15, %18 : vector<1x256xf32>
    %cst_5 = arith.constant 1.000000e+00 : f32
    %20 = vector.broadcast %cst_5 : f32 to vector<1x256xf32>
    %21 = arith.addf %15, %20 : vector<1x256xf32>
    %22 = arith.divf %19, %21 : vector<1x256xf32>
    %23 = arith.select %17, %22, %15 : vector<1x256xi1>, vector<1x256xf32>
    %24 = arith.mulf %23, %23 : vector<1x256xf32>
    %cst_6 = arith.constant 0.0805374458 : f32
    %25 = vector.broadcast %cst_6 : f32 to vector<1x256xf32>
    %26 = arith.mulf %25, %24 : vector<1x256xf32>
    %cst_7 = arith.constant 0.138776854 : f32
    %27 = vector.broadcast %cst_7 : f32 to vector<1x256xf32>
    %28 = arith.subf %26, %27 : vector<1x256xf32>
    %29 = arith.mulf %28, %24 : vector<1x256xf32>
    %cst_8 = arith.constant 0.199777111 : f32
    %30 = vector.broadcast %cst_8 : f32 to vector<1x256xf32>
    %31 = arith.addf %29, %30 : vector<1x256xf32>
    %32 = arith.mulf %31, %24 : vector<1x256xf32>
    %cst_9 = arith.constant 0.333329499 : f32
    %33 = vector.broadcast %cst_9 : f32 to vector<1x256xf32>
    %34 = arith.subf %32, %33 : vector<1x256xf32>
    %35 = arith.mulf %34, %24 : vector<1x256xf32>
    %36 = arith.mulf %35, %23 : vector<1x256xf32>
    %37 = arith.addf %36, %23 : vector<1x256xf32>
    %cst_10 = arith.constant 0.785398185 : f32
    %38 = vector.broadcast %cst_10 : f32 to vector<1x256xf32>
    %39 = arith.addf %37, %38 : vector<1x256xf32>
    %40 = arith.select %17, %39, %37 : vector<1x256xi1>, vector<1x256xf32>
    %cst_11 = arith.constant 1.57079637 : f32
    %41 = vector.broadcast %cst_11 : f32 to vector<1x256xf32>
    %42 = arith.subf %41, %40 : vector<1x256xf32>
    %43 = arith.select %8, %42, %40 : vector<1x256xi1>, vector<1x256xf32>
    %cst_12 = arith.constant 0.000000e+00 : f32
    %44 = vector.broadcast %cst_12 : f32 to vector<1x256xf32>
    %45 = arith.cmpf olt, %0, %44 : vector<1x256xf32>
    %cst_13 = arith.constant 3.14159274 : f32
    %46 = vector.broadcast %cst_13 : f32 to vector<1x256xf32>
    %47 = arith.subf %46, %43 : vector<1x256xf32>
    %48 = arith.select %45, %47, %43 : vector<1x256xi1>, vector<1x256xf32>
    %cst_14 = arith.constant 0.000000e+00 : f32
    %49 = vector.broadcast %cst_14 : f32 to vector<1x256xf32>
    %50 = arith.cmpf olt, %1, %49 : vector<1x256xf32>
    %cst_15 = arith.constant 0.000000e+00 : f32
    %51 = vector.broadcast %cst_15 : f32 to vector<1x256xf32>
    %52 = arith.subf %51, %48 : vector<1x256xf32>
    %53 = arith.select %50, %52, %48 : vector<1x256xi1>, vector<1x256xf32>
    %c0_16 = arith.constant 0 : index
    %c0_17 = arith.constant 0 : index
    %54 = vector.load %arg2[%c0_16, %c0_17] : memref<32x4xf32, #tpu.memory_space<vmem>>, vector<32x1xf32>
    %c0_18 = arith.constant 0 : index
    %c1_19 = arith.constant 1 : index
    %55 = vector.load %arg2[%c0_18, %c1_19] : memref<32x4xf32, #tpu.memory_space<vmem>>, vector<32x1xf32>
    %c0_20 = arith.constant 0 : index
    %c2 = arith.constant 2 : index
    %56 = vector.load %arg2[%c0_20, %c2] : memref<32x4xf32, #tpu.memory_space<vmem>>, vector<32x1xf32>
    %c0_21 = arith.constant 0 : index
    %c3 = arith.constant 3 : index
    %57 = vector.load %arg2[%c0_21, %c3] : memref<32x4xf32, #tpu.memory_space<vmem>>, vector<32x1xf32>
    %58 = vector.broadcast %54 : vector<32x1xf32> to vector<32x256xf32>
    %59 = vector.broadcast %5 : vector<1x256xf32> to vector<32x256xf32>
    %60 = arith.mulf %58, %59 : vector<32x256xf32>
    %61 = vector.broadcast %55 : vector<32x1xf32> to vector<32x256xf32>
    %62 = vector.broadcast %53 : vector<1x256xf32> to vector<32x256xf32>
    %63 = arith.mulf %61, %62 : vector<32x256xf32>
    %64 = arith.addf %60, %63 : vector<32x256xf32>
    %65 = vector.broadcast %56 : vector<32x1xf32> to vector<32x256xf32>
    %66 = arith.addf %64, %65 : vector<32x256xf32>
    %67 = math.tanh %66 : vector<32x256xf32>
    %c0_22 = arith.constant 0 : index
    %c0_23 = arith.constant 0 : index
    %68 = vector.load %arg5[%c0_22, %c0_23] : memref<32x256xf32, #tpu.memory_space<vmem>>, vector<32x256xf32>
    tpu.vector_store %arg5[%c0_22, %c0_23], %67 {strides = array<i32>} : memref<32x256xf32, #tpu.memory_space<vmem>>, vector<32x256xf32>,
    %69 = vector.broadcast %57 : vector<32x1xf32> to vector<32x256xf32>
    %70 = arith.mulf %69, %67 : vector<32x256xf32>
    %cst_24 = arith.constant dense<0.000000e+00> : vector<256xf32>
    %71 = vector.multi_reduction <add>, %70, %cst_24 [0] : vector<32x256xf32> to vector<256xf32>
    %72 = vector.shape_cast %71 : vector<256xf32> to vector<1x256xf32>
    %c0_25 = arith.constant 0 : index
    %c0_26 = arith.constant 0 : index
    %73 = memref.load %arg3[%c0_25, %c0_26] : memref<1x1xf32, #tpu.memory_space<smem>>
    %74 = vector.broadcast %73 : f32 to vector<1x256xf32>
    %75 = arith.addf %72, %74 : vector<1x256xf32>
    %76 = arith.negf %75 : vector<1x256xf32>
    %77 = math.exp %76 : vector<1x256xf32>
    %cst_27 = arith.constant 1.000000e+00 : f32
    %78 = vector.broadcast %cst_27 : f32 to vector<1x256xf32>
    %79 = arith.addf %78, %77 : vector<1x256xf32>
    %80 = arith.divf %78, %79 : vector<1x256xf32>
    %c0_28 = arith.constant 0 : index
    %c0_29 = arith.constant 0 : index
    %81 = vector.load %arg4[%c0_28, %c0_29] : memref<1x256xf32, #tpu.memory_space<vmem>>, vector<1x256xf32>
    tpu.vector_store %arg4[%c0_28, %c0_29], %80 {strides = array<i32>} : memref<1x256xf32, #tpu.memory_space<vmem>>, vector<1x256xf32>,
    return
  }
  func.func @transform_0(%arg0: i32) -> (i32, i32) {
    %c0_i32 = arith.constant 0 : i32
    %c0_i32_0 = arith.constant 0 : i32
    return %c0_i32, %arg0 : i32, i32
  }
  func.func @transform_1(%arg0: i32) -> (i32, i32) {
    %c0_i32 = arith.constant 0 : i32
    %c0_i32_0 = arith.constant 0 : i32
    %c0_i32_1 = arith.constant 0 : i32
    return %c0_i32, %c0_i32_0 : i32, i32
  }
  func.func @transform_2(%arg0: i32) -> (i32, i32) {
    %c0_i32 = arith.constant 0 : i32
    %c0_i32_0 = arith.constant 0 : i32
    %c0_i32_1 = arith.constant 0 : i32
    return %c0_i32, %c0_i32_0 : i32, i32
  }
  func.func @transform_3(%arg0: i32) -> (i32, i32) {
    %c0_i32 = arith.constant 0 : i32
    %c0_i32_0 = arith.constant 0 : i32
    return %c0_i32, %arg0 : i32, i32
  }
  func.func @transform_4(%arg0: i32) -> (i32, i32) {
    %c0_i32 = arith.constant 0 : i32
    %c0_i32_0 = arith.constant 0 : i32
    return %c0_i32, %arg0 : i32, i32
  }
}

</mosaic_0001>

<bundles_post_ra>
// kernel: tpu_custom_call.1
= control target key start
LH: loop header
LB: loop body
LE: loop exit
PB: predicated region body
PF: predicated region fallthrough
CT: control target
= control target key end

     0   :  { %s1006_s0 = inlined_call_operand.vmem [shape: f32[2,512], index: 0, kind: input, shape index: {}]   ;;  %s1007_s1 = inlined_call_operand.vmem [shape: f32[32,4], index: 1, kind: input, shape index: {}]   ;;  %s1008_s2 = inlined_call_operand.<no memory space> [shape: f32[1,1], index: 2, kind: input, shape index: {}]   ;;  %s1009_s3 = inlined_call_operand.hbm [shape: f32[1,512], index: 3, kind: output, shape index: {0}]   ;;  %s1010_s4 = inlined_call_operand.hbm [shape: f32[32,512], index: 4, kind: output, shape index: {1}]  }
   0x1   :  { %10 = sst [smem:[#allocation2]] %s1008_s2 }
   0x2   :  { %11 = vsyncpa [#allocation4], 0 }
   0x3   :  { %13 = vsyncpa [#allocation4 + $0x1], 0 }
   0x4   :  { %14 = vsyncpa [#allocation6], 0 }
   0x5   :  { %16 = vsyncpa [#allocation6 + $0x1], 0  ;;  %s840_s17 = smov 0   ;;  %s842_s18 = smov 0  }
   0x6   :  { %s844_s19 = smov 0   ;;  %s846_s20 = smov 0  }
   0x7 LB: > { %s861_s2 = sadd.s32 4294967295, %s800_s20   ;;  %s594_s21 = sadd.s32 4294967294, %s800_s20   ;;  %s800_s20 = sphi %s846_s20, %s1016_s20   ;;  %s796_s19 = sphi %s844_s19, %s1015_s19   ;;  %s792_s18 = sphi %s842_s18, %s1014_s18   ;;  %s788_s17 = sphi %s840_s17, %s1013_s17  }
   0x8   : > { %s865_s22 = sadd.s32 1, %s800_s20   ;;  %s97_s23 = sadd.s32 1, %s796_s19 }
   0x9   : > { %s94_s24 = ssub.s32 %s800_s20, %s865_s22  ;;  %p107_p0 = scmp.ne.s32.totalorder %s796_s19, %s792_s18 }
   0xa   : > { %p95_p1 = scmp.eq.s32.totalorder %s94_s24, 0  ;;  %p108_p2 = scmp.eq.s32.totalorder %s861_s2, 1 }
   0xb   : > { %p113_p3 = scmp.ne.s32.totalorder %s792_s18, %s788_s17  ;;  %p114_p4 = scmp.eq.s32.totalorder %s594_s21, 1 }
   0xc   : > { %s876_s25 = scalar_select %p95_p1, %s796_s19, %s97_s23  }
   0xd   : > { %p878_p5 = por %p108_p2, %p107_p0  ;;  %p882_p6 = por %p114_p4, %p113_p3 }
   0xe   : > { %p597_p7 = scmp.ge.s32.totalorder %s800_s20, 1  ;;  %p173_p8 = scmp.lt.s32.totalorder %s800_s20, 3 }
  0x10   : > { %p174_p9 = pnand %p597_p7, %p173_p8 }
  0x11   : > { %v260_v0 = vld [vmem:[%s1007_s1] sm:$0xff] (!%p174_p9)  ;;  %v802_v1 = vmov (!%p174_p9), 1   ;;  %v803_v2 = vmov (!%p174_p9), 0   ;;  %s600_s30 = sshll.u32 (!%p174_p9), %s861_s2, 1  ;;  %v261_v3 = vld [vmem:[%s1007_s1 + $0x8] sm:$0xff] (!%p174_p9)  ;;  %v262_v4 = vld [vmem:[%s1007_s1 + $0x10] sm:$0xff] (!%p174_p9)  ;;  %v285_v41 = vlaneseq (!%p174_p9) }
  0x12   : > { %177 = sbr.rel (%p174_p9) target bundleno = 260 (0x104), region = 32  ;;  %671 = vset.pattern.permute.xlu1 (!%p174_p9), %v802_v1  ;;  %670 = vset.pattern.permute.xlu0 (!%p174_p9), %v803_v2  ;;  %p205_p10 = scmp.lt.s32.totalorder (!%p174_p9), %s600_s30, 3  ;;  %v263_v9 = vld [vmem:[%s1007_s1 + $0x18] sm:$0xff] (!%p174_p9)  ;;  %v804_v11 = vmov (!%p174_p9), 2   ;;  %v805_v13 = vmov (!%p174_p9), 3  }
  0x13   : > { %304 = vperm.xlu1 (!%p174_p9), %671, %v260_v0   ;;  %266 = vperm.xlu0 (!%p174_p9), %670, %v260_v0   ;;  %v915_v44 = vshrl.u32 (!%p174_p9), %v285_v41, 7  ;;  %s921_s15 = sand.u32 (!%p174_p9), 1, %s792_s18   ;;  %s617_s24 = sshll.u32 (!%p174_p9), %s861_s2, 8 }
  0x14   : > { %s599_s16 = sshll.u32 (!%p174_p9), %s921_s15, 6  ;;  %s473_s5 = scalar_lea.sflag (!%p174_p9), [#allocation6], %s921_s15 }
  0x15   : > { %v287_v50 = vsub.s32 (!%p174_p9), 0, %v915_v44  ;;  %v291_v55 = vsub.s32 (!%p174_p9), 1, %v915_v44  ;;  %s203_s21 = scalar_lea.vmem (!%p174_p9), [#allocation5], %s599_s16 }
  0x16   : > { %s500_s23 = sshll.u32 (!%p174_p9), %s203_s21, 4  ;;  %s925_s23 = int_to_ptr.vmem [resolvable:$true] %s500_s23 }
  0x17   : > { %308 = vperm.xlu1 (!%p174_p9), %671, %v261_v3   ;;  %271 = vperm.xlu0 (!%p174_p9), %670, %v261_v3   ;;  %s706_s6 = scalar_lea.vmem (!%p174_p9), %s925_s23, 1024 }
  0x18   : > { %p707_p11 = scmp.ne.s32.totalorder (!%p174_p9), %s925_s23, %s706_s6 }
  0x19   : > { %s1018_s30 = smov (!%p205_p10, %s600_s30), 3 }
  0x1a   : > { %s601_s7 = sshll.u32 %s1018_s30, 1  ;;  %s930_s30 = scalar_lea.hbm %s1010_s4, %s617_s24 }
  0x1b   : > { %s208_s12 = scalar_lea.vmem %s1006_s0, %s601_s7  ;;  %312 = vperm.xlu1 %671, %v262_v4   ;;  %276 = vperm.xlu0 %670, %v262_v4   ;;  %p708_p12 = pnand %p707_p11, %p878_p5 }
  0x1c   : > { %v212_v5 = vld [vmem:[%s208_s12] ss:$2 sm:$0x3]  ;;  %v901_v6 = vld [vmem:[%s208_s12 + $0x1] ss:$2 sm:$0x3] }
  0x1d   : > { %v225_v7 = vand.u32 2147483647, %v901_v6  ;;  %v226_v8 = vand.u32 2147483647, %v212_v5  ;;  %v215_v32 = vmul.f32 %v212_v5, %v212_v5  ;;  %v216_v33 = vmul.f32 %v901_v6, %v901_v6  ;;  %p709_p13 = pneg %p708_p12  ;;  %s806_s7 = smov [#allocation5]  }
  0x1e   : > { %vm254_vm3 = vcmp.lt.f32.partialorder %v212_v5, 0.0  ;;  %vm257_vm5 = vcmp.lt.f32.partialorder %v901_v6, 0.0  ;;  %s710_s8 = sshll.u32 %s806_s7, 4  ;;  %s711_s8 = int_to_ptr.vmem [resolvable:$false] %s710_s8 }
  0x1f   : > { %316 = vperm.xlu1 %671, %v263_v9   ;;  %281 = vperm.xlu0 %670, %v263_v9   ;;  %vm227_vm0 = vcmp.gt.f32.partialorder %v225_v7, %v226_v8  ;;  %v217_v35 = vadd.f32 %v216_v33, %v215_v32  ;;  %s712_s9 = scalar_lea.vmem %s711_s8, 2048  ;;  %p713_p0 = scmp.lt.s32.totalorder %s925_s23, %s711_s8 }
  0x20   : > { %v229_v10 = vsel %vm227_vm0, %v225_v7, %v226_v8  ;;  %v228_v15 = vsel %vm227_vm0, %v226_v8, %v225_v7  ;;  %p714_p1 = scmp.lt.s32.totalorder %s712_s9, %s706_s6 }
  0x21   : > { %vm230_vm1 = vcmp.eq.f32.partialorder %v229_v10, 0.0  ;;  %vm220_vm4 = vcmp.eq.f32.partialorder %v217_v35, inf  ;;  %v223_v46 = vand.u32 2147483648, %v217_v35  ;;  %vm222_vm6 = vcmp.eq.f32.partialorder %v217_v35, 0.0 }
  0x22   : > { %v231_v12 = vsel %vm230_vm1, 1.0, %v229_v10  ;;  %p715_p2 = por %p714_p1, %p713_p0 }
  0x23   : > { %673 = vset.pattern.permute.xlu1 %v804_v11  ;;  %672 = vset.pattern.permute.xlu0 %v804_v11  ;;  %676 = vrcp.f32 %v231_v12 }
  0x24   : > { %351 = vperm.xlu1 %673, %v261_v3   ;;  %347 = vperm.xlu0 %672, %v260_v0   ;;  %p716_p3 = pnand %p715_p2, %p709_p13 }
  0x28   : > { %355 = vperm.xlu1 %673, %v262_v4   ;;  %359 = vperm.xlu0 %672, %v263_v9  }
  0x2c   : > { %674 = vset.pattern.permute.xlu1 %v805_v13  ;;  %675 = vset.pattern.permute.xlu0 %v805_v13 }
  0x2d   : > { %387 = vperm.xlu1 %674, %v260_v0   ;;  %391 = vperm.xlu0 %675, %v261_v3   ;;  %v677_v14 = vpop.eup %676 }
  0x2e   : > { %v233_v16 = vmul.f32 %v677_v14, %v228_v15 }
  0x30   : > { %v236_v17 = vadd.f32 1.0, %v233_v16  ;;  %v603_v18 = vadd.f32 -1.0, %v233_v16  ;;  %vm234_vm2 = vcmp.gt.f32.partialorder %v233_v16, 0.41421357 }
  0x31   : > { %395 = vperm.xlu1 %674, %v262_v4  }
  0x32   : > { %678 = vrcp.f32 %v236_v17 }
  0x33   : > { %680 = vrsqrt.f32 %v217_v35 }
  0x35   : > { %399 = vperm.xlu1 %674, %v263_v9  }
  0x3c   : > { %v679_v19 = vpop.eup %678 }
  0x3d   : > { %v238_v20 = vmul.f32 %v679_v19, %v603_v18  ;;  %v681_v40 = vpop.eup %680 }
  0x3e   : > { %v219_v43 = vmul.f32 %v681_v40, %v217_v35 }
  0x3f   : > { %v239_v21 = vsel %vm234_vm2, %v238_v20, %v233_v16 }
  0x40   : > { %v240_v22 = vmul.f32 %v239_v21, %v239_v21  ;;  %v221_v49 = vsel %vm220_vm4, %v217_v35, %v219_v43 }
  0x41   : > { %v224_v52 = vsel %vm222_vm6, %v223_v46, %v221_v49 }
  0x42   : > { %v241_v23 = vmul.f32 0.080537446, %v240_v22  ;;  %v288_v57 = vrot.slane %v224_v52, %v287_v50  ;;  %v292_v61 = vrot.slane %v224_v52, %v291_v55 }
  0x44   : > { %v604_v24 = vadd.f32 -0.13877685, %v241_v23 }
  0x46   : > { %v243_v25 = vmul.f32 %v604_v24, %v240_v22 }
  0x48   : > { %v244_v26 = vadd.f32 0.19977711, %v243_v25 }
  0x4a   : > { %v245_v27 = vmul.f32 %v244_v26, %v240_v22 }
  0x4c   : > { %v605_v28 = vadd.f32 -0.3333295, %v245_v27 }
  0x4e   : > { %v247_v29 = vmul.f32 %v605_v28, %v240_v22 }
  0x50   : > { %v248_v30 = vmul.f32 %v247_v29, %v239_v21 }
  0x52   : > { %v249_v31 = vadd.f32 %v248_v30, %v239_v21 }
  0x54   : > { %v250_v34 = vadd.f32 0.7853982, %v249_v31 }
  0x56   : > { %v251_v36 = vsel %vm234_vm2, %v250_v34, %v249_v31 }
  0x57   : > { %v252_v37 = vsub.f32 1.5707964, %v251_v36 }
  0x59   : > { %v253_v38 = vsel %vm227_vm0, %v252_v37, %v251_v36 }
  0x5a   : > { %v255_v39 = vsub.f32 3.1415927, %v253_v38 }
  0x5c   : > { %v256_v42 = vsel %vm254_vm3, %v255_v39, %v253_v38 }
  0x5d   : > { %v258_v45 = vsub.f32 0.0, %v256_v42 }
  0x5f   : > { %v259_v51 = vsel %vm257_vm5, %v258_v45, %v256_v42 }
  0x60   : > { %v323_v56 = vrot.slane %v259_v51, %v287_v50  ;;  %v327_v60 = vrot.slane %v259_v51, %v291_v55 }
  0x92   : > { %v305_v47 = vpop.permute.xlu1 %304  ;;  %v267_v48 = vpop.permute.xlu0 %266 }
  0x93   : > { %v330_v62 = vmul.f32 %v323_v56, %v305_v47  ;;  %v295_v63 = vmul.f32 %v288_v57, %v267_v48  ;;  %v331_v6 = vmul.f32 %v327_v60, %v305_v47  ;;  %v296_v7 = vmul.f32 %v292_v61, %v267_v48 }
  0x95   : > { %v338_v8 = vadd.f32 %v330_v62, %v295_v63  ;;  %v339_v21 = vadd.f32 %v331_v6, %v296_v7 }
  0x96   : > { %v309_v53 = vpop.permute.xlu1 %308  ;;  %v272_v54 = vpop.permute.xlu0 %271 }
  0x97   : > { %v332_v0 = vmul.f32 %v323_v56, %v309_v53  ;;  %v333_v1 = vmul.f32 %v327_v60, %v309_v53  ;;  %v297_v2 = vmul.f32 %v288_v57, %v272_v54  ;;  %v298_v3 = vmul.f32 %v292_v61, %v272_v54 }
  0x99   : > { %v340_v11 = vadd.f32 %v332_v0, %v297_v2  ;;  %v341_v12 = vadd.f32 %v333_v1, %v298_v3 }
  0x9a   : > { %v313_v58 = vpop.permute.xlu1 %312  ;;  %v277_v59 = vpop.permute.xlu0 %276 }
  0x9b   : > { %v334_v9 = vmul.f32 %v323_v56, %v313_v58  ;;  %v335_v10 = vmul.f32 %v327_v60, %v313_v58  ;;  %v299_v13 = vmul.f32 %v288_v57, %v277_v59  ;;  %v300_v14 = vmul.f32 %v292_v61, %v277_v59 }
  0x9d   : > { %v342_v26 = vadd.f32 %v334_v9, %v299_v13  ;;  %v343_v27 = vadd.f32 %v335_v10, %v300_v14 }
  0x9e   : > { %v317_v4 = vpop.permute.xlu1 %316  ;;  %v282_v5 = vpop.permute.xlu0 %281 }
  0x9f   : > { %v336_v15 = vmul.f32 %v323_v56, %v317_v4  ;;  %v301_v16 = vmul.f32 %v288_v57, %v282_v5  ;;  %v337_v17 = vmul.f32 %v327_v60, %v317_v4  ;;  %v302_v18 = vmul.f32 %v292_v61, %v282_v5 }
  0xa1   : > { %v344_v28 = vadd.f32 %v336_v15, %v301_v16  ;;  %v345_v31 = vadd.f32 %v337_v17, %v302_v18 }
  0xa3   : > { %v352_v19 = vpop.permute.xlu1 %351  ;;  %v348_v20 = vpop.permute.xlu0 %347 }
  0xa4   : > { %v364_v22 = vadd.f32 %v352_v19, %v340_v11  ;;  %v365_v23 = vadd.f32 %v352_v19, %v341_v12  ;;  %v362_v24 = vadd.f32 %v348_v20, %v338_v8  ;;  %v363_v25 = vadd.f32 %v348_v20, %v339_v21 }
  0xa6   : > { %682 = vtanh.f32 %v364_v22 }
  0xa7   : > { %684 = vtanh.f32 %v365_v23  ;;  %v356_v29 = vpop.permute.xlu1 %355  ;;  %v360_v30 = vpop.permute.xlu0 %359 }
  0xa8   : > { %686 = vtanh.f32 %v362_v24  ;;  %v366_v32 = vadd.f32 %v356_v29, %v342_v26  ;;  %v367_v33 = vadd.f32 %v356_v29, %v343_v27  ;;  %v368_v34 = vadd.f32 %v360_v30, %v344_v28 }
  0xa9   : > { %688 = vtanh.f32 %v363_v25  ;;  %v369_v35 = vadd.f32 %v360_v30, %v345_v31 }
  0xaa   : > { %690 = vtanh.f32 %v366_v32 }
  0xab   : > { %692 = vtanh.f32 %v367_v33 }
  0xac   : > { %694 = vtanh.f32 %v368_v34  ;;  %v388_v36 = vpop.permute.xlu1 %387  ;;  %v392_v37 = vpop.permute.xlu0 %391 }
  0xad   : > { %696 = vtanh.f32 %v369_v35 }
  0xb0   : > { %v683_v38 = vpop.eup %682  ;;  %v396_v39 = vpop.permute.xlu1 %395 }
  0xb1   : > { %v685_v40 = vpop.eup %684  ;;  %v404_v42 = vmul.f32 %v683_v38, %v392_v37  ;;  %380 = vst [vmem:[%s203_s21 + $0x10] sm:$0xff] %v683_v38 }
  0xb2   : > { %v687_v43 = vpop.eup %686  ;;  %v405_v45 = vmul.f32 %v685_v40, %v392_v37  ;;  %381 = vst [vmem:[%s203_s21 + $0x18] sm:$0xff] %v685_v40 }
  0xb3   : > { %v689_v46 = vpop.eup %688  ;;  %v402_v47 = vmul.f32 %v687_v43, %v388_v36  ;;  %378 = vst [vmem:[%s203_s21] sm:$0xff] %v687_v43 }
  0xb4   : > { %v691_v48 = vpop.eup %690  ;;  %v403_v49 = vmul.f32 %v689_v46, %v388_v36  ;;  %v400_v50 = vpop.permute.xlu1 %399  ;;  %379 = vst [vmem:[%s203_s21 + $0x8] sm:$0xff] %v689_v46 }
  0xb5   : > { %v693_v51 = vpop.eup %692  ;;  %v406_v52 = vmul.f32 %v691_v48, %v396_v39  ;;  %v410_v53 = vadd.f32 %v404_v42, %v402_v47  ;;  %382 = vst [vmem:[%s203_s21 + $0x20] sm:$0xff] %v691_v48 }
  0xb6   : > { %v695_v54 = vpop.eup %694  ;;  %v407_v55 = vmul.f32 %v693_v51, %v396_v39  ;;  %v419_v56 = vadd.f32 %v405_v45, %v403_v49  ;;  %383 = vst [vmem:[%s203_s21 + $0x28] sm:$0xff] %v693_v51 }
  0xb7   : > { %v697_v57 = vpop.eup %696  ;;  %v408_v58 = vmul.f32 %v695_v54, %v400_v50  ;;  %v411_v59 = vadd.f32 %v410_v53, %v406_v52  ;;  %384 = vst [vmem:[%s203_s21 + $0x30] sm:$0xff] %v695_v54 }
  0xb8   : > { %v409_v60 = vmul.f32 %v697_v57, %v400_v50  ;;  %v420_v61 = vadd.f32 %v419_v56, %v407_v55  ;;  %385 = vst [vmem:[%s203_s21 + $0x38] sm:$0xff] %v697_v57 }
  0xb9   : > { %v412_v62 = vadd.f32 %v411_v59, %v408_v58 }
  0xba   : > { %719 = shalt.err (!%p716_p3)
}
  0xbb   : > { %s720_s10 = scalar_lea.hbm %s930_s30, 1024  ;;  %s724_s13 = scalar_lea.hbm %s1010_s4, 2048 }
  0xbc   : > { %p721_p4 = scmp.ne.s32.totalorder %s930_s30, %s720_s10  ;;  %p725_p9 = scmp.lt.u32.totalorder %s930_s30, %s1010_s4 }
  0xbd   : > { %p726_p10 = scmp.lt.u32.totalorder %s724_s13, %s720_s10  ;;  %p728_p12 = scmp.lt.u32.totalorder %s720_s10, %s930_s30 }
  0xbe   : > { %p722_p7 = pnand %p721_p4, %p878_p5 }
  0xbf   : > { %p727_p11 = por %p726_p10, %p725_p9 }
  0xc0   : > { %p723_p8 = pneg %p722_p7 }
  0xc1   : > { %p729_p13 = por %p728_p12, %p727_p11 }
  0xc3   : > { %p730_p0 = pnand %p729_p13, %p723_p8 }
  0xc5   : > { %733 = shalt.err (!%p730_p0)
}
  0xc6   : > { %s807_s21 = smov 256   ;;  %s808_s24 = smov 512   ;;  %v421_v63 = vadd.f32 %v420_v61, %v409_v60  ;;  %v413_v0 = vrot.slane %v412_v62, 4  ;;  %v810_v21 = vmov 1966171168   ;;  %vm464_vm7 = vcmp.lt.s32.totalorder %v285_v41, 256 }
  0xc7   : > { %s809_s28 = smov 16   ;;  %s428_s29 = sld [smem:[#allocation2]]  ;;  %v448_v22 = vunpack.c.l.s4 %v810_v21 }
  0xc8   : > { %619 = dma.vmem_to_hbm [thread:$0]  (%p878_p5), %s925_s23, 1024, %s930_s30, %s473_s5, %s807_s21, %s808_s24, %s809_s28   ;;  %v422_v1 = vrot.slane %v421_v63, 4  ;;  %v414_v2 = vadd.f32 %v413_v0, %v412_v62 }
  0xc9   : > { %v449_v23 = vunpack.c.0.s8 %v448_v22  ;;  %s598_s23 = sshll.u32 %s921_s15, 1  ;;  %s616_s30 = sshll.u32 %s861_s2, 5 }
  0xca   : > { %v423_v3 = vadd.f32 %v422_v1, %v421_v63  ;;  %v415_v4 = vrot.slane %v414_v2, 2  ;;  %s196_s5 = scalar_lea.vmem [#allocation3], %s598_s23  ;;  %s963_s9 = scalar_lea.hbm %s1009_s3, %s616_s30 }
  0xcb   : > { %v452_v25 = vsub.s32 %v449_v23, %v915_v44  ;;  %s487_s6 = sshll.u32 %s196_s5, 4  ;;  %s468_s10 = scalar_lea.sflag [#allocation4], %s921_s15  ;;  %s965_s6 = int_to_ptr.vmem [resolvable:$true] %s487_s6 }
  0xcc   : > { %v424_v5 = vrot.slane %v423_v3, 2  ;;  %v416_v6 = vadd.f32 %v415_v4, %v414_v2  ;;  %s734_s11 = scalar_lea.vmem %s965_s6, 32  ;;  %s811_s2 = smov [#allocation3]  }
  0xcd   : > { %v429_v9 = vstv %s428_s29  ;;  %p735_p1 = scmp.ne.s32.totalorder %s965_s6, %s734_s11  ;;  %s738_s12 = sshll.u32 %s811_s2, 4  ;;  %s739_s12 = int_to_ptr.vmem [resolvable:$false] %s738_s12 }
  0xce   : > { %v425_v7 = vadd.f32 %v424_v5, %v423_v3  ;;  %v417_v8 = vrot.slane %v416_v6, 1  ;;  %s740_s13 = scalar_lea.vmem %s739_s12, 64  ;;  %p741_p4 = scmp.lt.s32.totalorder %s965_s6, %s739_s12 }
  0xcf   : > { %p736_p2 = pnand %p735_p1, %p878_p5  ;;  %p742_p7 = scmp.lt.s32.totalorder %s740_s13, %s734_s11 }
  0xd0   : > { %v426_v10 = vrot.slane %v425_v7, 1  ;;  %v418_v11 = vadd.f32 %v417_v8, %v416_v6 }
  0xd1   : > { %p737_p3 = pneg %p736_p2  ;;  %p743_p8 = por %p742_p7, %p741_p4 }
  0xd2   : > { %v427_v12 = vadd.f32 %v426_v10, %v425_v7  ;;  %v430_v13 = vadd.f32 %v429_v9, %v418_v11 }
  0xd3   : > { %p744_p9 = pnand %p743_p8, %p737_p3 }
  0xd4   : > { %v431_v14 = vadd.f32 %v429_v9, %v427_v12  ;;  %v606_v15 = vmul.f32 -1.442695, %v430_v13 }
  0xd6   : > { %v607_v16 = vmul.f32 -1.442695, %v431_v14  ;;  %698 = vpow2.f32 %v606_v15 }
  0xd8   : > { %700 = vpow2.f32 %v607_v16 }
  0xe0   : > { %v699_v17 = vpop.eup %698 }
  0xe1   : > { %v438_v19 = vadd.f32 1.0, %v699_v17 }
  0xe2   : > { %v701_v18 = vpop.eup %700 }
  0xe3   : > { %v439_v20 = vadd.f32 1.0, %v701_v18  ;;  %702 = vrcp.f32 %v438_v19 }
  0xe5   : > { %704 = vrcp.f32 %v439_v20 }
  0xed   : > { %v703_v24 = vpop.eup %702 }
  0xef   : > { %v705_v26 = vpop.eup %704 }
  0xf0   : > { %v446_v27 = vcombine.low %v703_v24, %v705_v26 }
  0xf2   : > { %v453_v28 = vrot.slane %v446_v27, %v452_v25 }
  0xf4   : > { %v460_v29 = vrot.slane %v453_v28, %v452_v25 }
  0xf6   : > { %466 = vst.msk [vmem:[%s196_s5] sm:$0x3] %vm464_vm7, %v460_v29 }
  0xf7   : > { %747 = shalt.err (!%p744_p9)
}
  0xf8   : > { %s748_s15 = scalar_lea.hbm %s963_s9, 32  ;;  %s752_s21 = scalar_lea.hbm %s1009_s3, 64 }
  0xf9   : > { %p749_p10 = scmp.ne.s32.totalorder %s963_s9, %s748_s15  ;;  %p753_p13 = scmp.lt.u32.totalorder %s963_s9, %s1009_s3 }
  0xfa   : > { %p754_p0 = scmp.lt.u32.totalorder %s752_s21, %s748_s15  ;;  %p756_p2 = scmp.lt.u32.totalorder %s748_s15, %s963_s9 }
  0xfb   : > { %p750_p11 = pnand %p749_p10, %p878_p5 }
  0xfc   : > { %p755_p1 = por %p754_p0, %p753_p13 }
  0xfd   : > { %p751_p12 = pneg %p750_p11 }
  0xfe   : > { %p757_p3 = por %p756_p2, %p755_p1 }
 0x100   : > { %p758_p4 = pnand %p757_p3, %p751_p12 }
 0x102   : > { %761 = shalt.err (!%p758_p4)
}
 0x103   : > { %618 = dma.vmem_to_hbm [thread:$0]  (%p878_p5), %s965_s6, 32, %s963_s9, %s468_s10  }
 0x104 PF: > { %p629_p7 = scmp.ge.s32.totalorder %s800_s20, 2  ;;  %s515_s29 = sand.u32 1, %s788_s17  }
 0x105   : > { %s516_s23 = scalar_lea.sflag [#allocation4], %s515_s29 }
 0x106   : > { %p623_p8 = pnand %p629_p7, %p882_p6 }
 0x108   : > { %779 = dma.done.wait (!%p623_p8), %s516_s23, 32  }
 0x109   : > { %781 = vsyncadd (!%p623_p8), %s516_s23, 4294967264  ;;  %s525_s30 = scalar_lea.sflag [#allocation6], %s515_s29 }
 0x10a   : > { %783 = dma.done.wait (!%p623_p8), %s525_s30, 1024  }
 0x10b   : > { %785 = vsyncadd (!%p623_p8), %s525_s30, 4294966272  ;;  %p19_p5 = scmp.ge.s32.totalorder %s865_s22, 4   ;;  %s1013_s17 = smov %s792_s18 }
 0x10c   : > { %s1014_s18 = smov %s796_s19  ;;  %s1015_s19 = smov %s876_s25 }
 0x10d   : > { %s1016_s20 = smov %s865_s22  ;;  %21 = sbr.rel (!%p19_p5) target bundleno = 7 (0x7), region = 85 }
 0x114   :  { %530 = vsyncpa [#allocation4], 1 }
 0x115   :  { %532 = vsyncpa [#allocation4 + $0x1], 1 }
 0x116   :  { %533 = vsyncpa [#allocation6], 1 }
 0x117   :  { %535 = vsyncpa [#allocation6 + $0x1], 1 }

</bundles_post_ra>
